<compile_context>
chip_gen: v7x
topology: tpu7x:2x2x1
jax: 0.10.0
libtpu: 0.0.40
codegen_flags: <defaults>
</compile_context>

<pallas_src>
import functools

import jax
import jax.numpy as jnp
from jax.experimental import pallas as pl
from jax.experimental.pallas import tpu as pltpu

_LANE = 128
_SUBLANE = 8


def _round_up(x, m):
    return ((x + m - 1) // m) * m


def _linker_kernel(x_ref, w1_ref, b1_ref, w2_ref, o_ref, h_ref):
    # x_ref : (tr, K)   tile of flattened (B*M) mention rows
    # w1_ref: (K, E)    projection weight, (in, out) layout, grid-invariant
    # b1_ref: (1, E)    projection bias, grid-invariant
    # w2_ref: (E, tn)   tile of entity-embedding weight, (in, out) layout
    # o_ref : (tr, tn)  output logits tile
    # h_ref : (tr, E)   scratch in the MXU input dtype, reused across entity tiles

    # Projection computed exactly once per row tile (the entity axis is the
    # inner, "arbitrary" grid axis); bias added exactly once; cast to the MXU
    # input dtype exactly once (not re-cast per entity tile).
    @pl.when(pl.program_id(1) == 0)
    def _():
        h = jnp.dot(x_ref[...], w1_ref[...], preferred_element_type=jnp.float32)
        h_ref[...] = (h + b1_ref[...].astype(jnp.float32)).astype(h_ref.dtype)

    o_ref[...] = jnp.dot(h_ref[...], w2_ref[...],
                         preferred_element_type=jnp.float32).astype(o_ref.dtype)


def prepare_linker_params(w_proj, b_proj, w_ent):
    """One-time (model-load) conversion of the PyTorch Linear layouts.

    - transposes (out, in) -> (in, out)
    - pads the entity axis of w2 to a multiple of 128 ONCE, so the per-call
      path never copies the entity matrix.
    Returns (w1, b1, w2_padded, num_entities).
    """
    # TODO(synk): quantize w2 here (int8 on v5e/v6e, fp8 on v7x) with
    # per-entity scales to shrink the dominant HBM stream; kept full precision
    # to preserve the PyTorch module's numerics.
    w1 = jnp.transpose(w_proj)               # (2H, E)
    b1 = jnp.asarray(b_proj).reshape(1, -1)  # (1, E)
    w2 = jnp.transpose(w_ent)                # (E, N)
    n = w2.shape[1]
    n_pad = _round_up(n, _LANE)
    if n_pad != n:
        w2 = jnp.pad(w2, ((0, 0), (0, n_pad - n)))
    return w1, b1, w2, n


def _vmem_budget_bytes():
    phys = 64 << 20  # conservative fallback (v7x per-TensorCore VMEM)
    try:
        phys = int(pltpu.get_tpu_info().vmem_capacity_bytes)
    except Exception:
        pass
    # Leave headroom for Mosaic internal scratch:
    #   64 MiB parts (v7x)        -> ~54 MiB budget
    #   128 MiB parts (v5e/v6e)   -> ~108 MiB budget
    return max(min(int(phys * 0.85), phys - (8 << 20)), 4 << 20)


def _vmem_need_bytes(tr, tn, K, E, x_isz, w_isz, o_isz):
    return (2 * tr * K * x_isz          # x row tiles (double-buffered)
            + 2 * K * E * w_isz         # w1 (Pallas double-buffers even invariant blocks)
            + 2 * E * w_isz             # b1
            + 2 * E * tn * w_isz        # w2 entity tiles (double-buffered)
            + 2 * tr * tn * o_isz       # output tiles (double-buffered)
            + tr * E * w_isz)           # h scratch (MXU input dtype)


def _pick_tiles(R, Np, K, E, x_isz, w_isz, o_isz, row_tile, ent_tile, budget):
    # tn: largest multiple of 128 that divides Np (grid is exact, no per-call
    # padding / masked stores on the entity axis) and fits the VMEM budget.
    units = Np // _LANE
    max_units = max(1, min(ent_tile // _LANE, units))
    tn_cands = [_LANE * d for d in range(max_units, 0, -1) if units % d == 0]
    # tr: as large as possible (fewer w2 re-streams), shrunk only if VMEM-bound.
    tr = min(_round_up(row_tile, _SUBLANE), _round_up(R, _SUBLANE))
    while True:
        for tn in tn_cands:
            if _vmem_need_bytes(tr, tn, K, E, x_isz, w_isz, o_isz) <= budget:
                return tr, tn
        if tr <= _SUBLANE:
            return tr, tn_cands[-1]   # best effort: smallest legal tiles
        tr = _round_up(max(_SUBLANE, tr // 2), _SUBLANE)


@functools.partial(jax.jit,
                   static_argnames=("num_entities", "row_tile", "ent_tile"))
def kebio_linker(hidden_states, w1, b1, w2, num_entities=None, *,
                 row_tile=512, ent_tile=1024):
    """
    hidden_states: (B, M, 2*H)
    w1: (2*H, E)  projection weight, (in, out) layout
    b1: (1, E) or (E,) projection bias
    w2: (E, Np)   entity-embedding weight, (in, out) layout, entity axis already
                  padded to a multiple of 128 by prepare_linker_params
    num_entities: true (unpadded) entity count; defaults to w2.shape[1]
    returns: (B, M, num_entities)
    """
    B, M, K = hidden_states.shape
    E, Np = w2.shape
    N = int(num_entities) if num_entities is not None else Np
    out_dtype = hidden_states.dtype
    x_isz = jnp.dtype(hidden_states.dtype).itemsize
    w_isz = jnp.dtype(w2.dtype).itemsize
    o_isz = jnp.dtype(out_dtype).itemsize

    R = B * M
    x = hidden_states.reshape(R, K)
    b1 = b1.reshape(1, E)

    budget = _vmem_budget_bytes()
    tr, tn = _pick_tiles(R, Np, K, E, x_isz, w_isz, o_isz,
                         row_tile, ent_tile, budget)
    Rp = _round_up(R, tr)
    if Rp != R:
        x = jnp.pad(x, ((0, Rp - R), (0, 0)))   # cheap: rows only, never w2

    grid = (Rp // tr, Np // tn)
    row_tiles = grid[0]

    # Advisory cost estimate: w2 is re-streamed from HBM once per row tile.
    flops = 2 * Rp * K * E + 2 * Rp * E * Np
    bytes_accessed = (Rp * K * x_isz                       # x
                      + K * E * w_isz + E * w_isz          # w1, b1
                      + row_tiles * E * Np * w_isz         # w2 stream (dominant)
                      + Rp * Np * o_isz)                   # logits write
    if Rp != R or Np != N:
        bytes_accessed += 2 * R * N * o_isz                # post-kernel slice copy
    cost = pl.CostEstimate(flops=int(flops), transcendentals=0,
                           bytes_accessed=int(bytes_accessed))

    need = _vmem_need_bytes(tr, tn, K, E, x_isz, w_isz, o_isz)
    vmem_limit = int(min(budget, max(2 * need, 16 << 20)))

    out = pl.pallas_call(
        _linker_kernel,
        out_shape=jax.ShapeDtypeStruct((Rp, Np), out_dtype),
        grid_spec=pltpu.PrefetchScalarGridSpec(
            num_scalar_prefetch=0,
            grid=grid,
            in_specs=[
                pl.BlockSpec((tr, K), lambda i, j: (i, 0)),   # x row tile
                pl.BlockSpec((K, E), lambda i, j: (0, 0)),    # w1 (grid-invariant)
                pl.BlockSpec((1, E), lambda i, j: (0, 0)),    # b1 (grid-invariant)
                pl.BlockSpec((E, tn), lambda i, j: (0, j)),   # w2 entity tile
            ],
            out_specs=pl.BlockSpec((tr, tn), lambda i, j: (i, j)),
            # h scratch in the MXU input dtype: cast once per row tile at
            # j == 0, re-read (not re-cast) for every entity tile.
            scratch_shapes=[pltpu.VMEM((tr, E), w2.dtype)],
        ),
        compiler_params=pltpu.CompilerParams(
            # Row axis may shard across TensorCores; entity axis must stay
            # sequential ("arbitrary") because h is written at j == 0 and reused.
            dimension_semantics=("parallel", "arbitrary"),
            vmem_limit_bytes=vmem_limit,
        ),
        cost_estimate=cost,
    )(x, w1, b1, w2)

    # TODO(synk): emitting logits in bf16 would halve the dominant output
    # stream; kept in the input dtype to match the PyTorch module's numerics.
    if Rp != R or Np != N:
        out = out[:R, :N]
    return out.reshape(B, M, N)


if __name__ == "__main__":
    # Small config consistent with the module:
    #   hidden_size = 32 -> mention_size = 2*hidden_size = 64
    #   entity_size = 32, num_entities = 200 (not a lane multiple -> exercises
    #   the one-time offline padding + the post-kernel slice)
    #   B=2, M=10 -> R=20 (exercises row padding)
    B, M = 2, 10
    hidden_size = 32
    entity_size = 32
    num_entities = 200
    mention_size = 2 * hidden_size

    key = jax.random.PRNGKey(0)
    k_x, k_w1, k_b1, k_w2 = jax.random.split(key, 4)

    hidden_states = jax.random.normal(k_x, (B, M, mention_size), dtype=jnp.float32)
    # PyTorch nn.Linear weight layouts: (out_features, in_features)
    w_proj = jax.random.normal(k_w1, (entity_size, mention_size), jnp.float32) * 0.02
    b_proj = jax.random.normal(k_b1, (entity_size,), jnp.float32) * 0.02
    w_ent = jax.random.normal(k_w2, (num_entities, entity_size), jnp.float32) * 0.02

    # One-time weight layout conversion + entity-axis padding (model-load path,
    # NOT paid per forward call).
    w1, b1, w2p, n_ent = prepare_linker_params(w_proj, b_proj, w_ent)

    # ent_tile=128 so the test runs >1 entity tile and exercises h-scratch reuse.
    out = kebio_linker(hidden_states, w1, b1, w2p, n_ent,
                       row_tile=512, ent_tile=128)
    out = jax.block_until_ready(out)

    # Reference in plain JAX (same math as the PyTorch forward).
    ref = (hidden_states @ w_proj.T + b_proj) @ w_ent.T
    assert out.shape == (B, M, num_entities)
    assert jnp.allclose(out, ref, atol=1e-4, rtol=1e-4), \
        float(jnp.max(jnp.abs(out - ref)))

    print("KERNEL_OK")
</pallas_src>

<mosaic_0001>
module attributes {stable_mosaic.version = 11 : i64} {
  func.func @_linker_kernel(%arg0: i32, %arg1: i32, %arg2: memref<24x64xf32, #tpu.memory_space<vmem>>, %arg3: memref<64x32xf32, #tpu.memory_space<vmem>>, %arg4: memref<1x32xf32, #tpu.memory_space<vmem>>, %arg5: memref<32x128xf32, #tpu.memory_space<vmem>>, %arg6: memref<24x128xf32, #tpu.memory_space<vmem>>, %arg7: memref<24x32xf32, #tpu.memory_space<vmem>>) attributes {dimension_semantics = [#tpu.dimension_semantics<parallel>, #tpu.dimension_semantics<arbitrary>], iteration_bounds = array<i64: 1, 2>, scalar_prefetch = 0 : i64, scratch_operands = 1 : i64, tpu.core_type = #tpu.core_type<tc>, window_params = [{transform_indices = @transform_0, window_bounds = array<i64: 24, 64>}, {pipeline_mode = #tpu.pipeline_mode<synchronous>, transform_indices = @transform_1, window_bounds = array<i64: 64, 32>}, {pipeline_mode = #tpu.pipeline_mode<synchronous>, transform_indices = @transform_2, window_bounds = array<i64: 1, 32>}, {transform_indices = @transform_3, window_bounds = array<i64: 32, 128>}, {transform_indices = @transform_4, window_bounds = array<i64: 24, 128>}]} {
    %c0_i32 = arith.constant 0 : i32
    %0 = arith.cmpi eq, %arg1, %c0_i32 : i32
    %1 = arith.extui %0 : i1 to i32
    %c0_i32_0 = arith.constant 0 : i32
    %2 = arith.cmpi ne, %1, %c0_i32_0 : i32
    scf.if %2 {
      %c0_6 = arith.constant 0 : index
      %c0_7 = arith.constant 0 : index
      %7 = vector.load %arg2[%c0_6, %c0_7] : memref<24x64xf32, #tpu.memory_space<vmem>>, vector<24x64xf32>
      %c0_8 = arith.constant 0 : index
      %c0_9 = arith.constant 0 : index
      %8 = vector.load %arg3[%c0_8, %c0_9] : memref<64x32xf32, #tpu.memory_space<vmem>>, vector<64x32xf32>
      %cst_10 = arith.constant dense<0.000000e+00> : vector<24x32xf32>
      %9 = tpu.matmul %7, %8, %cst_10 {dimension_numbers = #tpu.dot_dimension_numbers<[1], [0], [0], [1], [0, 0, 1, 1], [], []>} : vector<24x64xf32>, vector<64x32xf32>, vector<24x32xf32> -> vector<24x32xf32>
      %c0_11 = arith.constant 0 : index
      %c0_12 = arith.constant 0 : index
      %10 = vector.load %arg4[%c0_11, %c0_12] : memref<1x32xf32, #tpu.memory_space<vmem>>, vector<1x32xf32>
      %11 = vector.broadcast %10 : vector<1x32xf32> to vector<24x32xf32>
      %12 = arith.addf %9, %11 : vector<24x32xf32>
      %c0_13 = arith.constant 0 : index
      %c0_14 = arith.constant 0 : index
      %13 = vector.load %arg7[%c0_13, %c0_14] : memref<24x32xf32, #tpu.memory_space<vmem>>, vector<24x32xf32>
      tpu.vector_store %arg7[%c0_13, %c0_14], %12 {strides = array<i32>} : memref<24x32xf32, #tpu.memory_space<vmem>>, vector<24x32xf32>,
    } else {
    }
    %c0 = arith.constant 0 : index
    %c0_1 = arith.constant 0 : index
    %3 = vector.load %arg7[%c0, %c0_1] : memref<24x32xf32, #tpu.memory_space<vmem>>, vector<24x32xf32>
    %c0_2 = arith.constant 0 : index
    %c0_3 = arith.constant 0 : index
    %4 = vector.load %arg5[%c0_2, %c0_3] : memref<32x128xf32, #tpu.memory_space<vmem>>, vector<32x128xf32>
    %cst = arith.constant dense<0.000000e+00> : vector<24x128xf32>
    %5 = tpu.matmul %3, %4, %cst {dimension_numbers = #tpu.dot_dimension_numbers<[1], [0], [0], [1], [0, 0, 1, 1], [], []>} : vector<24x32xf32>, vector<32x128xf32>, vector<24x128xf32> -> vector<24x128xf32>
    %c0_4 = arith.constant 0 : index
    %c0_5 = arith.constant 0 : index
    %6 = vector.load %arg6[%c0_4, %c0_5] : memref<24x128xf32, #tpu.memory_space<vmem>>, vector<24x128xf32>
    tpu.vector_store %arg6[%c0_4, %c0_5], %5 {strides = array<i32>} : memref<24x128xf32, #tpu.memory_space<vmem>>, vector<24x128xf32>,
    return
  }
  func.func @transform_0(%arg0: i32, %arg1: i32) -> (i32, i32) {
    %c0_i32 = arith.constant 0 : i32
    %c0_i32_0 = arith.constant 0 : i32
    return %arg0, %c0_i32 : i32, i32
  }
  func.func @transform_1(%arg0: i32, %arg1: i32) -> (i32, i32) {
    %c0_i32 = arith.constant 0 : i32
    %c0_i32_0 = arith.constant 0 : i32
    %c0_i32_1 = arith.constant 0 : i32
    return %c0_i32, %c0_i32_0 : i32, i32
  }
  func.func @transform_2(%arg0: i32, %arg1: i32) -> (i32, i32) {
    %c0_i32 = arith.constant 0 : i32
    %c0_i32_0 = arith.constant 0 : i32
    %c0_i32_1 = arith.constant 0 : i32
    return %c0_i32, %c0_i32_0 : i32, i32
  }
  func.func @transform_3(%arg0: i32, %arg1: i32) -> (i32, i32) {
    %c0_i32 = arith.constant 0 : i32
    %c0_i32_0 = arith.constant 0 : i32
    return %c0_i32, %arg1 : i32, i32
  }
  func.func @transform_4(%arg0: i32, %arg1: i32) -> (i32, i32) {
    %c0_i32 = arith.constant 0 : i32
    return %arg0, %arg1 : i32, i32
  }
}

</mosaic_0001>

<bundles_post_ra>
// kernel: kebio_linker.1
= control target key start
LH: loop header
LB: loop body
LE: loop exit
PB: predicated region body
PF: predicated region fallthrough
CT: control target
= control target key end

     0   :  { %s853_s15 = smov 0   ;;  %s855_s16 = smov 0   ;;  %s982_s0 = inlined_call_operand.vmem [shape: f32[24,64], index: 0, kind: input, shape index: {}]   ;;  %s983_s1 = inlined_call_operand.vmem [shape: f32[64,32], index: 1, kind: input, shape index: {}]   ;;  %s984_s2 = inlined_call_operand.vmem [shape: f32[1,32], index: 2, kind: input, shape index: {}]   ;;  %s985_s3 = inlined_call_operand.vmem [shape: f32[32,256], index: 3, kind: input, shape index: {}]   ;;  %s986_s4 = inlined_call_operand.vmem [shape: f32[24,256], index: 4, kind: output, shape index: {}]  }
   0x1   :  { %s857_s17 = smov 0   ;;  %s859_s18 = smov 0  }
   0x2   :  { %s861_s19 = smov 0  }
   0x3 LB: > { %s23_s20 = sadd.s32 1, %s816_s18  ;;  %s625_s21 = sadd.s32 4294967295, %s820_s19   ;;  %s820_s19 = sphi %s861_s19, %s14_s19   ;;  %s816_s18 = sphi %s859_s18, %s991_s18   ;;  %s812_s17 = sphi %s857_s17, %s990_s17   ;;  %s808_s16 = sphi %s855_s16, %s989_s16   ;;  %s804_s15 = sphi %s853_s15, %s988_s15  }
   0x4   : > { %p24_p0 = scmp.ge.s32.totalorder %s23_s20, 2  ;;  %p108_p1 = scmp.ne.s32.totalorder %s808_s16, %s804_s15 }
   0x5   : > { %p109_p2 = scmp.eq.s32.totalorder %s820_s19, 0  ;;  %p140_p4 = scmp.eq.s32.totalorder %s625_s21, 1 }
   0x6   : > { %s993_s20 = smov (%p24_p0, %s23_s20), 0  ;;  %s101_s23 = sadd.s32 1, %s808_s16 }
   0x7   : > { %p110_p3 = por %p109_p2, %p108_p1  ;;  %s98_s22 = ssub.s32 %s816_s18, %s993_s20 }
   0x8   : > { %p99_p5 = scmp.eq.s32.totalorder %s98_s22, 0  ;;  %p888_p6 = por %p140_p4, %p108_p1 }
   0x9   : > { %p629_p7 = scmp.ge.s32.totalorder %s820_s19, 2 }
   0xa   : > { %s893_s25 = scalar_select %p99_p5, %s808_s16, %s101_s23  }
   0xb   : > { %177 = sbr.rel (%p629_p7) target bundleno = 25 (0x19), region = 28 }
  0x12   : > { %180 = sbr.rel (!%p110_p3) target bundleno = 25 (0x19), region = 32  ;;  %s182_s26 = sand.u32 (%p110_p3), 1, %s808_s16  }
  0x13   : > { %s631_s27 = sshll.u32 (%p110_p3), %s816_s18, 3  ;;  %s630_s28 = sshll.u32 (%p110_p3), %s182_s26, 5 }
  0x14   : > { %s186_s5 = scalar_lea.vmem (%p110_p3), %s985_s3, %s631_s27  ;;  %s184_s6 = scalar_lea.vmem (%p110_p3), [#allocation3], %s630_s28 }
  0x15   : > { %v220_v0 = vld [vmem:[%s186_s5] sm:$0xff] (%p110_p3)  ;;  %v222_v1 = vld [vmem:[%s186_s5 + $0x10] sm:$0xff] (%p110_p3) }
  0x16   : > { %v224_v2 = vld [vmem:[%s186_s5 + $0x20] sm:$0xff] (%p110_p3)  ;;  %221 = vst [vmem:[%s184_s6] sm:$0xff] (%p110_p3), %v220_v0  ;;  %223 = vst [vmem:[%s184_s6 + $0x8] sm:$0xff] (%p110_p3), %v222_v1  ;;  %v226_v3 = vld [vmem:[%s186_s5 + $0x30] sm:$0xff] (%p110_p3) }
  0x17   : > { %225 = vst [vmem:[%s184_s6 + $0x10] sm:$0xff] (%p110_p3), %v224_v2  ;;  %227 = vst [vmem:[%s184_s6 + $0x18] sm:$0xff] (%p110_p3), %v226_v3 }
  0x19 PF: > { %p632_p8 = scmp.ge.s32.totalorder %s820_s19, 1  ;;  %p232_p9 = scmp.lt.s32.totalorder %s820_s19, 3 }
  0x1b   : > { %p233_p10 = pnand %p632_p8, %p232_p9 }
  0x1c   : > { %s239_s7 = sand.u32 (!%p233_p10), 1, %s804_s15   ;;  %p634_p11 = scmp.ne.s32.totalorder (!%p233_p10), %s812_s17, 0 }
  0x1d   : > { %236 = sbr.rel (%p233_p10) target bundleno = 508 (0x1fc), region = 70  ;;  %s633_s8 = sshll.u32 (!%p233_p10), %s239_s7, 5 }
  0x1e   : > { %s735_s9 = smul.u32 (!%p233_p10), 24, %s239_s7  ;;  %s904_s10 = scalar_lea.vmem (!%p233_p10), [#allocation3], %s633_s8 }
  0x20   : > { %s906_s11 = scalar_lea.vmem (!%p233_p10), [#allocation4], %s735_s9 }
  0x24   : > { %278 = sbr.rel (%p634_p11) target bundleno = 273 (0x111), region = 78  ;;  %v282_v4 = vld [vmem:[%s983_s1] sm:$0xff] (!%p634_p11)  ;;  %v283_v5 = vld [vmem:[%s983_s1 + $0x8] sm:$0xff] (!%p634_p11)  ;;  %v284_v6 = vld [vmem:[%s983_s1 + $0x10] sm:$0xff] (!%p634_p11)  ;;  %v822_v7 = vmov (!%p634_p11), 0.0|0.0   ;;  %vm823_vm0 = vmmov (!%p634_p11), 0  }
  0x25   : > { %723 = vmatprep.subr.bf16.mxu1 (!%p634_p11), %v822_v7  ;;  %v706_v8 = vpack.c.bf16 (!%p634_p11), %v283_v5, %v282_v4  ;;  %705 = vmatprep.subr.bf16.mxu0 (!%p634_p11), %v822_v7  ;;  %v285_v9 = vld [vmem:[%s983_s1 + $0x18] sm:$0xff] (!%p634_p11)  ;;  %v824_v10 = vmov (!%p634_p11), 0.0   ;;  %v286_v12 = vld [vmem:[%s983_s1 + $0x20] sm:$0xff] (!%p634_p11)  ;;  %v287_v13 = vld [vmem:[%s983_s1 + $0x28] sm:$0xff] (!%p634_p11)  ;;  %vm297_vm1 = vcmask (!%p634_p11), 523264   ;;  %vm387_vm2 = vcmask (!%p634_p11), 261120  }
  0x26   : > { %682 = vmatprep.mubr.msk.f32.mxu1 (!%p634_p11), %vm823_vm0, %v824_v10  ;;  %679 = vmatprep.mubr.msk.f32.mxu0 (!%p634_p11), %vm823_vm0, %v824_v10  ;;  %v709_v11 = vpack.c.bf16 (!%p634_p11), %v285_v9, %v284_v6  ;;  %v712_v14 = vpack.c.bf16 (!%p634_p11), %v287_v13, %v286_v12  ;;  %v288_v15 = vld [vmem:[%s983_s1 + $0x30] sm:$0xff] (!%p634_p11)  ;;  %v289_v16 = vld [vmem:[%s983_s1 + $0x38] sm:$0xff] (!%p634_p11)  ;;  %v280_v18 = vld [vmem:[%s982_s0 + $0x8] sm:$0xff] (!%p634_p11) }
  0x27   : > { %727 = vmatpush3.bf16.msra.mxu1 (!%p634_p11), %v706_v8  ;;  %707 = vmatpush3.bf16.msra.mxu0 (!%p634_p11), %v706_v8  ;;  %v715_v17 = vpack.c.bf16 (!%p634_p11), %v289_v16, %v288_v15  ;;  %v279_v19 = vld [vmem:[%s982_s0] sm:$0xff] (!%p634_p11)  ;;  %v281_v20 = vld [vmem:[%s982_s0 + $0x10] sm:$0xff] (!%p634_p11) }
  0x28   : > { %724 = vmatprep.subr.bf16.mxu1 (!%p634_p11), %v822_v7  ;;  %708 = vmatprep.subr.bf16.mxu0 (!%p634_p11), %v822_v7  ;;  %v635_v21 = vld [vmem:[%s984_s2] ss:$0 sm:$0xff] (!%p634_p11) }
  0x2b   : > { %728 = vmatpush3.bf16.msra.mxu1 %v709_v11  ;;  %710 = vmatpush3.bf16.msra.mxu0 %v709_v11 }
  0x2c   : > { %725 = vmatprep.subr.bf16.mxu1 %v822_v7  ;;  %711 = vmatprep.subr.bf16.mxu0 %v822_v7 }
  0x2f   : > { %729 = vmatpush3.bf16.msra.mxu1 %v712_v14  ;;  %713 = vmatpush3.bf16.msra.mxu0 %v712_v14 }
  0x30   : > { %726 = vmatprep.subr.bf16.mxu1 %v822_v7  ;;  %714 = vmatprep.subr.bf16.mxu0 %v822_v7 }
  0x33   : > { %730 = vmatpush3.bf16.msra.mxu1 %v715_v17  ;;  %716 = vmatpush3.bf16.msra.mxu0 %v715_v17 }
  0x36   : > { %683 = vmatmul.mubr.msk.f32.vlgmr.msra.gmra.mrb[0].mxu1 %vm297_vm1, %v280_v18  ;;  %680 = vmatmul.mubr.msk.f32.vlgmr.msra.gmra.mrb[0].mxu0 %vm297_vm1, %v279_v19 }
  0x37   : > { %685 = vmatprep.mubr.msk.f32.mxu1 %vm823_vm0, %v824_v10 }
  0x3a   : > { %686 = vmatmul.mubr.msk.f32.gmra.mrb[2].mxu1 %vm297_vm1, %v281_v20 }
 0x109   : > { %v378_v22 = vpop.f32.mrb[0].mxu1  ;;  %v373_v23 = vpop.f32.mrb[0].mxu0 }
 0x10a   : > { %v379_v24 = vadd.f32 %v635_v21, %v378_v22  ;;  %v684_v25 = vpop.f32.mrb[1].mxu1  ;;  %v374_v26 = vadd.f32 %v635_v21, %v373_v23  ;;  %v681_v27 = vpop.f32.mrb[1].mxu0 }
 0x10c   : > { %389 = vst.msk [vmem:[#allocation2 + $0x8] sm:$0xff] %vm387_vm2, %v379_v24  ;;  %388 = vst.msk [vmem:[#allocation2] sm:$0xff] %vm387_vm2, %v374_v26 }
 0x10d   : > { %v383_v28 = vpop.f32.mrb[2].mxu1 }
 0x10e   : > { %v384_v29 = vadd.f32 %v635_v21, %v383_v28  ;;  %v687_v30 = vpop.f32.mrb[3].mxu1 }
 0x110   : > { %390 = vst.msk [vmem:[#allocation2 + $0x10] sm:$0xff] %vm387_vm2, %v384_v29 }
 0x111 PF: > { %v394_v31 = vld [vmem:[%s904_s10] sm:$0xff]  ;;  %v395_v32 = vld [vmem:[%s904_s10 + $0x8] sm:$0xff]  ;;  %v396_v33 = vld [vmem:[%s904_s10 + $0x10] sm:$0xff]  ;;  %v825_v34 = vmov 0.0|0.0   ;;  %vm826_vm3 = vmmov 0   ;;  %v827_v37 = vmov 0.0  }
 0x112   : > { %731 = vmatprep.subr.bf16.mxu1 %v825_v34  ;;  %v718_v35 = vpack.c.bf16 %v395_v32, %v394_v31  ;;  %717 = vmatprep.subr.bf16.mxu0 %v825_v34  ;;  %v397_v36 = vld [vmem:[%s904_s10 + $0x18] sm:$0xff]  ;;  %vm398_vm4 = vcmask 261120   ;;  %s642_s10 = sshll.u32 (%p888_p6), %s812_s17, 3 }
 0x113   : > { %699 = vmatprep.mubr.msk.f32.mxu1 %vm826_vm3, %v827_v37  ;;  %696 = vmatprep.mubr.msk.f32.mxu0 %vm826_vm3, %v827_v37  ;;  %v721_v38 = vpack.c.bf16 %v397_v36, %v396_v33  ;;  %v392_v39 = vld [vmem:[#allocation2 + $0x8] sm:$0xff]  ;;  %v391_v40 = vld [vmem:[#allocation2] sm:$0xff]  ;;  %s502_s28 = scalar_lea.vmem (%p888_p6), %s986_s4, %s642_s10 }
 0x114   : > { %733 = vmatpush3.bf16.msra.mxu1 %v718_v35  ;;  %719 = vmatpush3.bf16.msra.mxu0 %v718_v35 }
 0x115   : > { %732 = vmatprep.subr.bf16.mxu1 %v825_v34  ;;  %720 = vmatprep.subr.bf16.mxu0 %v825_v34 }
 0x117   : > { %v393_v41 = vld [vmem:[#allocation2 + $0x10] sm:$0xff] }
 0x118   : > { %734 = vmatpush3.bf16.msra.mxu1 %v721_v38  ;;  %722 = vmatpush3.bf16.msra.mxu0 %v721_v38 }
 0x11b   : > { %700 = vmatmul.mubr.msk.f32.vlgmr.msra.gmra.mrb[0].mxu1 %vm398_vm4, %v392_v39  ;;  %697 = vmatmul.mubr.msk.f32.vlgmr.msra.gmra.mrb[0].mxu0 %vm398_vm4, %v391_v40 }
 0x11c   : > { %702 = vmatprep.mubr.msk.f32.mxu1 %vm826_vm3, %v827_v37 }
 0x11f   : > { %703 = vmatmul.mubr.msk.f32.gmra.mrb[2].mxu1 %vm398_vm4, %v393_v41 }
 0x1ed   : > { %497 = sbr.rel (!%p888_p6) target bundleno = 508 (0x1fc), region = 82 }
 0x1ee   : > { %v479_v42 = vpop.f32.mrb[0].mxu1  ;;  %v474_v43 = vpop.f32.mrb[0].mxu0 }
 0x1ef   : > { %489 = vst [vmem:[%s906_s11 + $0x8] sm:$0xff] %v479_v42  ;;  %v701_v44 = vpop.f32.mrb[1].mxu1  ;;  %488 = vst [vmem:[%s906_s11] sm:$0xff] %v474_v43  ;;  %v698_v45 = vpop.f32.mrb[1].mxu0 }
 0x1f2   : > { %v484_v46 = vpop.f32.mrb[2].mxu1 }
 0x1f3   : > { %490 = vst [vmem:[%s906_s11 + $0x10] sm:$0xff] %v484_v46  ;;  %v704_v47 = vpop.f32.mrb[3].mxu1 }
 0x1f6   : > { %v534_v48 = vld [vmem:[%s906_s11] sm:$0xff]  ;;  %v536_v49 = vld [vmem:[%s906_s11 + $0x8] sm:$0xff] }
 0x1f7   : > { %535 = vst [vmem:[%s502_s28] sm:$0xff] %v534_v48  ;;  %537 = vst [vmem:[%s502_s28 + $0x10] sm:$0xff] %v536_v49 }
 0x1fa   : > { %v538_v50 = vld [vmem:[%s906_s11 + $0x10] sm:$0xff] }
 0x1fb   : > { %539 = vst [vmem:[%s502_s28 + $0x20] sm:$0xff] %v538_v50 }
 0x1fc PF: > { %s14_s19 = sadd.s32 1, %s820_s19   ;;  %s988_s15 = smov %s808_s16 }
 0x1fd   : > { %p11_p12 = scmp.ge.s32.totalorder %s14_s19, 4   ;;  %s989_s16 = smov %s893_s25 }
 0x1fe   : > { %s990_s17 = smov %s816_s18  ;;  %s991_s18 = smov %s993_s20 }
 0x1ff   :  { %13 = sbr.rel (!%p11_p12) target bundleno = 3 (0x3), region = 154 }

</bundles_post_ra>
